<compile_context>
chip_gen: v5e
topology: v5e:2x2
jax: 0.10.0
libtpu: 0.0.40
codegen_flags: <defaults>
</compile_context>

<pallas_src>
import functools

import jax
import jax.numpy as jnp
from jax import lax
from jax.experimental import pallas as pl
from jax.experimental.pallas import tpu as pltpu


def _round_up(x, m):
    return (x + m - 1) // m * m


def _vmem_limit_bytes():
    """Generation-aware scoped-VMEM limit with headroom for Mosaic scratch."""
    phys = None
    try:
        info = pltpu.get_tpu_info()
        phys = getattr(info, "vmem_capacity_bytes", None)
    except Exception:
        phys = None
    if not phys:
        phys = 64 * 2**20  # conservative default (v7x per-TensorCore VMEM)
    return int(min(phys * 0.8, 100 * 2**20))


def _choose_tiles(B, V, H, budget_bytes, elt_bytes=4):
    """Pick (batch_tile, vocab_tile) fitting the VMEM budget.

    Working set ~= 2*tb*tv (x, double-buffered) + 2*tv*H (w1) + tb*H (acc), f32.
    Batch tiles are multiples of 128 (lane-dense output) dividing
    round_up(B, 128), so at most one 128-row remainder tile is ever wasted.
    """
    B128 = _round_up(B, 128)
    tb_cap = min(B128, 1024)  # tiles >=512 already reach ~85-86% of HBM roofline
    tb_cands = [t for t in range(128, tb_cap + 1, 128) if B128 % t == 0]
    tb_cands.sort(reverse=True)

    for tb in tb_cands:
        fixed = tb * H * elt_bytes + 4 * H * elt_bytes + 2 * tb * elt_bytes + (64 << 10)
        avail = budget_bytes - fixed
        if avail <= 0:
            continue
        # Prefer a single V step if the whole vocab row fits (no accumulation,
        # no ragged-V masking).
        if 2 * tb * V * elt_bytes + 2 * V * H * elt_bytes <= avail:
            return tb, V
        tv = (avail // (2 * elt_bytes * (tb + H))) // 128 * 128
        tv = min(tv, _round_up(V, 128))
        if tv >= 128:
            return tb, int(tv)
    return 128, 128  # pathological budget fallback


def _bow_kernel(x_ref, w1_ref, b1_ref, w2_ref, b2_ref, o_ref, acc_ref,
                *, v_total, tv, mask_tail):
    # x:  (tb, tv)          w1: (tv, H)        b1: (1, H) f32
    # w2: (1, H) f32        b2: (1,) f32 SMEM  o: (1, tb) f32 (batch on lanes)
    # acc: (tb, H) f32 VMEM scratch, persists across the V ("arbitrary") axis.
    ki = pl.program_id(1)

    @pl.when(ki == 0)
    def _init():
        acc_ref[...] = jnp.zeros_like(acc_ref)

    x = x_ref[...]
    if mask_tail:
        # Zero vocab columns past V on the ragged last V tile so OOB garbage
        # never reaches the accumulator (w1 tail rows are zero-padded too).
        limit = v_total - ki * tv
        col = lax.broadcasted_iota(jnp.int32, x.shape, dimension=1)
        x = jnp.where(col < limit, x, jnp.zeros_like(x))

    acc_ref[...] += jnp.dot(x, w1_ref[...], preferred_element_type=jnp.float32)

    @pl.when(ki == pl.num_programs(1) - 1)
    def _finalize():
        h = jnp.maximum(acc_ref[...] + b1_ref[...], 0.0)            # linear1 + ReLU
        # linear2: contract H of w2 (1,H) with H of h (tb,H) -> (1, tb).
        # Batch lands directly on lanes -> dense, unmasked store; the trailing
        # .unsqueeze(2) stays a free reshape in the wrapper.
        y = lax.dot_general(
            w2_ref[...], h,
            dimension_numbers=(((1,), (1,)), ((), ())),
            preferred_element_type=jnp.float32,
        )
        o_ref[...] = (y + b2_ref[0]).astype(o_ref.dtype)


def bow_classifier_forward(bow_vec, w1, b1, w2, b2):
    """bow_vec: (B, V). w1: (V, H), b1: (1, H), w2: (H, 1), b2: (1, 1).
    Returns (B, 1, 1), matching torch's .unsqueeze(2)."""
    B, V = bow_vec.shape
    H = w1.shape[1]

    vmem_limit = _vmem_limit_bytes()
    tb, tv = _choose_tiles(B, V, H, int(vmem_limit * 0.6))

    grid_b = pl.cdiv(B, tb)

    if tv == V:
        grid_k = 1
        w1_in = w1.astype(jnp.float32)
        mask_tail = False
    else:
        v_pad = _round_up(V, tv)
        grid_k = v_pad // tv
        # w1 is a small parameter; zero-pad its vocab rows once so the ragged
        # V tail contributes nothing (x tail columns are masked in-kernel).
        w1_in = w1.astype(jnp.float32)
        if v_pad != V:
            w1_in = jnp.pad(w1_in, ((0, v_pad - V), (0, 0)))
        mask_tail = (V % tv) != 0

    b1_row = b1.reshape(1, H).astype(jnp.float32)
    w2_row = w2.reshape(1, H).astype(jnp.float32)   # (H,1) -> (1,H) row
    b2_s = jnp.asarray(b2, jnp.float32).reshape(-1)[:1]  # 1-D (1,) SMEM scalar

    kernel = functools.partial(_bow_kernel, v_total=V, tv=tv, mask_tail=mask_tail)

    out = pl.pallas_call(
        kernel,
        out_shape=jax.ShapeDtypeStruct((1, grid_b * tb), jnp.float32),
        grid=(grid_b, grid_k),
        in_specs=[
            pl.BlockSpec((tb, tv), lambda bi, ki: (bi, ki)),    # x streams per (b,k) tile
            pl.BlockSpec((tv, H), lambda bi, ki: (ki, 0)),      # w1 streams over V
            pl.BlockSpec((1, H), lambda bi, ki: (0, 0)),        # b1 resident (tiny)
            pl.BlockSpec((1, H), lambda bi, ki: (0, 0)),        # w2 row resident (tiny)
            pl.BlockSpec(memory_space=pltpu.MemorySpace.SMEM),  # b2 scalar
        ],
        out_specs=pl.BlockSpec((1, tb), lambda bi, ki: (0, bi)),  # lane-dense, const over ki
        scratch_shapes=[pltpu.VMEM((tb, H), jnp.float32)],        # f32 accumulator
        compiler_params=pltpu.CompilerParams(
            dimension_semantics=("parallel", "arbitrary"),
            vmem_limit_bytes=vmem_limit,
        ),
    )(bow_vec, w1_in, b1_row, w2_row, b2_s)

    # torch: self.linear2(out).unsqueeze(2) -> (B, 1, 1)
    return out[0, :B].reshape(B, 1, 1)


if __name__ == "__main__":
    # Small shapes consistent with the module: vocab_size=256, hidden_dim=32.
    B, V, H = 2, 256, 32

    key = jax.random.PRNGKey(0)
    k_x, k_w1, k_b1, k_w2, k_b2 = jax.random.split(key, 5)

    # Integer BoW counts and deterministic params in the (in, out) layout the
    # kernel consumes (equivalent to nn.Linear weights transposed).
    bow_vec = jnp.floor(jax.random.uniform(k_x, (B, V), dtype=jnp.float32) * 4.0)
    w1 = jax.random.normal(k_w1, (V, H), dtype=jnp.float32) * (1.0 / jnp.sqrt(V))
    b1 = jax.random.normal(k_b1, (1, H), dtype=jnp.float32) * 0.01
    w2 = jax.random.normal(k_w2, (H, 1), dtype=jnp.float32) * (1.0 / jnp.sqrt(H))
    b2 = jax.random.normal(k_b2, (1, 1), dtype=jnp.float32) * 0.01

    out = bow_classifier_forward(bow_vec, w1, b1, w2, b2)
    out = jax.block_until_ready(out)

    # Pure-f32 JAX reference (same math as the f32 PyTorch module).
    h_ref = jnp.maximum(
        jnp.dot(bow_vec, w1, precision=lax.Precision.HIGHEST) + b1, 0.0)
    ref = (jnp.dot(h_ref, w2, precision=lax.Precision.HIGHEST) + b2).reshape(B, 1, 1)

    assert out.shape == (B, 1, 1)
    assert jnp.allclose(out, ref, atol=2e-2, rtol=2e-2), (out, ref)

    print("KERNEL_OK")
</pallas_src>

<mosaic_0001>
module attributes {stable_mosaic.version = 11 : i64} {
  func.func @_bow_kernel(%arg0: i32, %arg1: i32, %arg2: memref<128x256xf32, #tpu.memory_space<vmem>>, %arg3: memref<256x32xf32, #tpu.memory_space<vmem>>, %arg4: memref<1x32xf32, #tpu.memory_space<vmem>>, %arg5: memref<1x32xf32, #tpu.memory_space<vmem>>, %arg6: memref<1xf32, #tpu.memory_space<smem>>, %arg7: memref<1x128xf32, #tpu.memory_space<vmem>>, %arg8: memref<128x32xf32, #tpu.memory_space<vmem>>) attributes {dimension_semantics = [#tpu.dimension_semantics<parallel>, #tpu.dimension_semantics<arbitrary>], iteration_bounds = array<i64: 1, 1>, scalar_prefetch = 0 : i64, scratch_operands = 1 : i64, tpu.core_type = #tpu.core_type<tc>, window_params = [{transform_indices = @transform_0, window_bounds = array<i64: 128, 256>}, {transform_indices = @transform_1, window_bounds = array<i64: 256, 32>}, {pipeline_mode = #tpu.pipeline_mode<synchronous>, transform_indices = @transform_2, window_bounds = array<i64: 1, 32>}, {pipeline_mode = #tpu.pipeline_mode<synchronous>, transform_indices = @transform_3, window_bounds = array<i64: 1, 32>}, {transform_indices = @transform_4, window_bounds = array<i64: 1>}, {transform_indices = @transform_5, window_bounds = array<i64: 1, 128>}]} {
    %c0_i32 = arith.constant 0 : i32
    %0 = arith.cmpi eq, %arg1, %c0_i32 : i32
    %1 = arith.extui %0 : i1 to i32
    %c0_i32_0 = arith.constant 0 : i32
    %2 = arith.cmpi ne, %1, %c0_i32_0 : i32
    scf.if %2 {
      %cst_10 = arith.constant 0.000000e+00 : f32
      %12 = vector.broadcast %cst_10 : f32 to vector<128x32xf32>
      %c0_11 = arith.constant 0 : index
      %c0_12 = arith.constant 0 : index
      %13 = vector.load %arg8[%c0_11, %c0_12] : memref<128x32xf32, #tpu.memory_space<vmem>>, vector<128x32xf32>
      tpu.vector_store %arg8[%c0_11, %c0_12], %12 {strides = array<i32>} : memref<128x32xf32, #tpu.memory_space<vmem>>, vector<128x32xf32>,
    } else {
    }
    %c0 = arith.constant 0 : index
    %c0_1 = arith.constant 0 : index
    %3 = vector.load %arg2[%c0, %c0_1] : memref<128x256xf32, #tpu.memory_space<vmem>>, vector<128x256xf32>
    %c0_2 = arith.constant 0 : index
    %c0_3 = arith.constant 0 : index
    %4 = vector.load %arg8[%c0_2, %c0_3] : memref<128x32xf32, #tpu.memory_space<vmem>>, vector<128x32xf32>
    %c0_4 = arith.constant 0 : index
    %c0_5 = arith.constant 0 : index
    %5 = vector.load %arg3[%c0_4, %c0_5] : memref<256x32xf32, #tpu.memory_space<vmem>>, vector<256x32xf32>
    %cst = arith.constant dense<0.000000e+00> : vector<128x32xf32>
    %6 = tpu.matmul %3, %5, %cst {dimension_numbers = #tpu.dot_dimension_numbers<[1], [0], [0], [1], [0, 0, 1, 1], [], []>} : vector<128x256xf32>, vector<256x32xf32>, vector<128x32xf32> -> vector<128x32xf32>
    %7 = arith.addf %4, %6 : vector<128x32xf32>
    %c0_6 = arith.constant 0 : index
    %c0_7 = arith.constant 0 : index
    %8 = vector.load %arg8[%c0_6, %c0_7] : memref<128x32xf32, #tpu.memory_space<vmem>>, vector<128x32xf32>
    tpu.vector_store %arg8[%c0_6, %c0_7], %7 {strides = array<i32>} : memref<128x32xf32, #tpu.memory_space<vmem>>, vector<128x32xf32>,
    %c0_i32_8 = arith.constant 0 : i32
    %9 = arith.cmpi eq, %arg1, %c0_i32_8 : i32
    %10 = arith.extui %9 : i1 to i32
    %c0_i32_9 = arith.constant 0 : i32
    %11 = arith.cmpi ne, %10, %c0_i32_9 : i32
    scf.if %11 {
      %c0_10 = arith.constant 0 : index
      %c0_11 = arith.constant 0 : index
      %12 = vector.load %arg8[%c0_10, %c0_11] : memref<128x32xf32, #tpu.memory_space<vmem>>, vector<128x32xf32>
      %c0_12 = arith.constant 0 : index
      %c0_13 = arith.constant 0 : index
      %13 = vector.load %arg4[%c0_12, %c0_13] : memref<1x32xf32, #tpu.memory_space<vmem>>, vector<1x32xf32>
      %14 = vector.broadcast %13 : vector<1x32xf32> to vector<128x32xf32>
      %15 = arith.addf %12, %14 : vector<128x32xf32>
      %cst_14 = arith.constant 0.000000e+00 : f32
      %16 = vector.broadcast %cst_14 : f32 to vector<128x32xf32>
      %17 = arith.maximumf %15, %16 : vector<128x32xf32>
      %c0_15 = arith.constant 0 : index
      %c0_16 = arith.constant 0 : index
      %18 = vector.load %arg5[%c0_15, %c0_16] : memref<1x32xf32, #tpu.memory_space<vmem>>, vector<1x32xf32>
      %cst_17 = arith.constant dense<0.000000e+00> : vector<1x128xf32>
      %19 = tpu.matmul %18, %17, %cst_17 {dimension_numbers = #tpu.dot_dimension_numbers<[1], [1], [0], [0], [0, 0, 1, 0], [], []>} : vector<1x32xf32>, vector<128x32xf32>, vector<1x128xf32> -> vector<1x128xf32>
      %c0_18 = arith.constant 0 : index
      %20 = memref.load %arg6[%c0_18] : memref<1xf32, #tpu.memory_space<smem>>
      %21 = vector.broadcast %20 : f32 to vector<1x128xf32>
      %22 = arith.addf %19, %21 : vector<1x128xf32>
      %c0_19 = arith.constant 0 : index
      %c0_20 = arith.constant 0 : index
      %23 = vector.load %arg7[%c0_19, %c0_20] : memref<1x128xf32, #tpu.memory_space<vmem>>, vector<1x128xf32>
      tpu.vector_store %arg7[%c0_19, %c0_20], %22 {strides = array<i32>} : memref<1x128xf32, #tpu.memory_space<vmem>>, vector<1x128xf32>,
    } else {
    }
    return
  }
  func.func @transform_0(%arg0: i32, %arg1: i32) -> (i32, i32) {
    %c0_i32 = arith.constant 0 : i32
    return %arg0, %arg1 : i32, i32
  }
  func.func @transform_1(%arg0: i32, %arg1: i32) -> (i32, i32) {
    %c0_i32 = arith.constant 0 : i32
    %c0_i32_0 = arith.constant 0 : i32
    return %arg1, %c0_i32 : i32, i32
  }
  func.func @transform_2(%arg0: i32, %arg1: i32) -> (i32, i32) {
    %c0_i32 = arith.constant 0 : i32
    %c0_i32_0 = arith.constant 0 : i32
    %c0_i32_1 = arith.constant 0 : i32
    return %c0_i32, %c0_i32_0 : i32, i32
  }
  func.func @transform_3(%arg0: i32, %arg1: i32) -> (i32, i32) {
    %c0_i32 = arith.constant 0 : i32
    %c0_i32_0 = arith.constant 0 : i32
    %c0_i32_1 = arith.constant 0 : i32
    return %c0_i32, %c0_i32_0 : i32, i32
  }
  func.func @transform_4(%arg0: i32, %arg1: i32) -> i32 {
    %c0_i32 = arith.constant 0 : i32
    %c0_i32_0 = arith.constant 0 : i32
    return %c0_i32 : i32
  }
  func.func @transform_5(%arg0: i32, %arg1: i32) -> (i32, i32) {
    %c0_i32 = arith.constant 0 : i32
    %c0_i32_0 = arith.constant 0 : i32
    return %c0_i32, %arg0 : i32, i32
  }
}

</mosaic_0001>

<bundles_post_ra>
// kernel: tpu_custom_call.1
= control target key start
LH: loop header
LB: loop body
LE: loop exit
PB: predicated region body
PF: predicated region fallthrough
CT: control target
= control target key end

     0   :  { %s1106_s0 = inlined_call_operand.vmem [shape: f32[2,256], index: 0, kind: input, shape index: {}]   ;;  %s1107_s1 = inlined_call_operand.vmem [shape: f32[256,32], index: 1, kind: input, shape index: {}]   ;;  %s1108_s2 = inlined_call_operand.vmem [shape: f32[1,32], index: 2, kind: input, shape index: {}]   ;;  %s1109_s3 = inlined_call_operand.vmem [shape: f32[1,32], index: 3, kind: input, shape index: {}]   ;;  %s1110_s4 = inlined_call_operand.<no memory space> [shape: f32[1], index: 4, kind: input, shape index: {}]   ;;  %s1111_s5 = inlined_call_operand.hbm [shape: f32[1,128], index: 5, kind: output, shape index: {}]  }
   0x1   :  { %v138_v0 = vld [vmem:[%s1107_s1 + $0x78] sm:$0xff]  ;;  %v137_v2 = vld [vmem:[%s1107_s1 + $0x70] sm:$0xff]  ;;  %v136_v4 = vld [vmem:[%s1107_s1 + $0x68] sm:$0xff] }
   0x2   :  { %v154_v1 = vld [vmem:[%s1107_s1 + $0xf8] sm:$0xff]  ;;  %354 = vmatpush.msra.mxu0 %v138_v0  ;;  %v153_v3 = vld [vmem:[%s1107_s1 + $0xf0] sm:$0xff]  ;;  %v152_v5 = vld [vmem:[%s1107_s1 + $0xe8] sm:$0xff]  ;;  %680 = vmatpush.msra.mxu3 %v138_v0 }
   0x3   :  { %419 = vmatpush.msra.mxu1 %v154_v1  ;;  %v135_v6 = vld [vmem:[%s1107_s1 + $0x60] sm:$0xff]  ;;  %v134_v8 = vld [vmem:[%s1107_s1 + $0x58] sm:$0xff]  ;;  %v133_v10 = vld [vmem:[%s1107_s1 + $0x50] sm:$0xff] }
   0x4   :  { %355 = vmatpush.msra.mxu0 %v137_v2  ;;  %v151_v7 = vld [vmem:[%s1107_s1 + $0xe0] sm:$0xff]  ;;  %681 = vmatpush.msra.mxu3 %v137_v2  ;;  %v150_v9 = vld [vmem:[%s1107_s1 + $0xd8] sm:$0xff]  ;;  %v149_v11 = vld [vmem:[%s1107_s1 + $0xd0] sm:$0xff] }
   0x5   :  { %420 = vmatpush.msra.mxu1 %v153_v3  ;;  %v132_v12 = vld [vmem:[%s1107_s1 + $0x48] sm:$0xff]  ;;  %v43_v14 = vld [vmem:[%s1106_s0] sm:$0xf]  ;;  %v44_v15 = vld [vmem:[%s1106_s0 + $0x4] sm:$0xf] }
   0x6   :  { %356 = vmatpush.msra.mxu0 %v136_v4  ;;  %682 = vmatpush.msra.mxu3 %v136_v4  ;;  %v148_v13 = vld [vmem:[%s1107_s1 + $0xc8] sm:$0xff]  ;;  %v131_v17 = vld [vmem:[%s1107_s1 + $0x40] sm:$0xff]  ;;  %219 = vst [vmem:[#allocation1] ss:$4 sm:$0xff] %v43_v14  ;;  %v47_v20 = vld [vmem:[%s1106_s0 + $0x10] sm:$0xf] }
   0x7   :  { %421 = vmatpush.msra.mxu1 %v152_v5  ;;  %v45_v16 = vld [vmem:[%s1106_s0 + $0x8] sm:$0xf]  ;;  %v147_v18 = vld [vmem:[%s1107_s1 + $0xc0] sm:$0xff]  ;;  %v46_v19 = vld [vmem:[%s1106_s0 + $0xc] sm:$0xf] }
   0x8   :  { %357 = vmatpush.msra.mxu0 %v135_v6  ;;  %683 = vmatpush.msra.mxu3 %v135_v6  ;;  %221 = vst [vmem:[#allocation1 + $0x1] ss:$4 sm:$0xff] %v44_v15  ;;  %v130_v21 = vld [vmem:[%s1107_s1 + $0x38] sm:$0xff]  ;;  %v48_v23 = vld [vmem:[%s1106_s0 + $0x14] sm:$0xf]  ;;  %v128_v28 = vld [vmem:[%s1107_s1 + $0x28] sm:$0xff] }
   0x9   :  { %422 = vmatpush.msra.mxu1 %v151_v7  ;;  %v146_v22 = vld [vmem:[%s1107_s1 + $0xb8] sm:$0xff]  ;;  %223 = vst [vmem:[#allocation1 + $0x2] ss:$4 sm:$0xff] %v45_v16  ;;  %v129_v25 = vld [vmem:[%s1107_s1 + $0x30] sm:$0xff]  ;;  %v144_v29 = vld [vmem:[%s1107_s1 + $0xa8] sm:$0xff] }
   0xa   :  { %358 = vmatpush.msra.mxu0 %v134_v8  ;;  %684 = vmatpush.msra.mxu3 %v134_v8  ;;  %225 = vst [vmem:[#allocation1 + $0x3] ss:$4 sm:$0xff] %v46_v19  ;;  %v49_v24 = vld [vmem:[%s1106_s0 + $0x18] sm:$0xf]  ;;  %v145_v26 = vld [vmem:[%s1107_s1 + $0xb0] sm:$0xff] }
   0xb   :  { %423 = vmatpush.msra.mxu1 %v150_v9  ;;  %v50_v27 = vld [vmem:[%s1106_s0 + $0x1c] sm:$0xf]  ;;  %227 = vst [vmem:[#allocation1 + $0x20] ss:$4 sm:$0xff] %v47_v20 }
   0xc   :  { %359 = vmatpush.msra.mxu0 %v133_v10  ;;  %685 = vmatpush.msra.mxu3 %v133_v10  ;;  %229 = vst [vmem:[#allocation1 + $0x21] ss:$4 sm:$0xff] %v48_v23 }
   0xd   :  { %424 = vmatpush.msra.mxu1 %v149_v11  ;;  %231 = vst [vmem:[#allocation1 + $0x22] ss:$4 sm:$0xff] %v49_v24 }
   0xe   :  { %360 = vmatpush.msra.mxu0 %v132_v12  ;;  %686 = vmatpush.msra.mxu3 %v132_v12 }
   0xf   :  { %425 = vmatpush.msra.mxu1 %v148_v13 }
  0x10   :  { %361 = vmatpush.msra.mxu0 %v131_v17  ;;  %687 = vmatpush.msra.mxu3 %v131_v17 }
  0x11   :  { %426 = vmatpush.msra.mxu1 %v147_v18 }
  0x12   :  { %362 = vmatpush.msra.mxu0 %v130_v21  ;;  %688 = vmatpush.msra.mxu3 %v130_v21 }
  0x13   :  { %427 = vmatpush.msra.mxu1 %v146_v22 }
  0x14   :  { %11 = vsyncpa [#allocation5], 0  ;;  %363 = vmatpush.msra.mxu0 %v129_v25  ;;  %v127_v30 = vld [vmem:[%s1107_s1 + $0x20] sm:$0xff]  ;;  %233 = vst [vmem:[#allocation1 + $0x23] ss:$4 sm:$0xff] %v50_v27  ;;  %v126_v32 = vld [vmem:[%s1107_s1 + $0x18] sm:$0xff]  ;;  %689 = vmatpush.msra.mxu3 %v129_v25 }
  0x15   :  { %428 = vmatpush.msra.mxu1 %v145_v26  ;;  %v143_v31 = vld [vmem:[%s1107_s1 + $0xa0] sm:$0xff]  ;;  %v142_v34 = vld [vmem:[%s1107_s1 + $0x98] sm:$0xff]  ;;  %v53_v36 = vld [vmem:[%s1106_s0 + $0x28] sm:$0xf]  ;;  %vm26_vm0 = vcmask 261120   ;;  %s726_s10 = smov [#allocation4]  }
  0x16   :  { %v51_v33 = vld [vmem:[%s1106_s0 + $0x20] sm:$0xf]  ;;  %364 = vmatpush.msra.mxu0 %v128_v28  ;;  %v52_v35 = vld [vmem:[%s1106_s0 + $0x24] sm:$0xf]  ;;  %690 = vmatpush.msra.mxu3 %v128_v28  ;;  %v125_v39 = vld [vmem:[%s1107_s1 + $0x10] sm:$0xff]  ;;  %s652_s11 = sshll.u32 %s726_s10, 4  ;;  %s653_s11 = int_to_ptr.vmem [resolvable:$true] %s652_s11 }
  0x17   :  { %429 = vmatpush.msra.mxu1 %v144_v29  ;;  %v234_v37 = vld.sshfl [vmem:[#allocation1] sm:$0xff pattern:$0x73625140]  ;;  %v235_v38 = vld.sshfl [vmem:[#allocation1 + $0x8] sm:$0xff pattern:$0x73625140] }
  0x18   :  { %365 = vmatpush.msra.mxu0 %v127_v30  ;;  %238 = vst [vmem:[#allocation1] ss:$4 sm:$0xff] %v51_v33  ;;  %v141_v40 = vld [vmem:[%s1107_s1 + $0x90] sm:$0xff]  ;;  %v124_v41 = vld [vmem:[%s1107_s1 + $0x8] sm:$0xff]  ;;  %691 = vmatpush.msra.mxu3 %v127_v30  ;;  %v57_v47 = vld [vmem:[%s1106_s0 + $0x38] sm:$0xf] }
  0x19   :  { %430 = vmatpush.msra.mxu1 %v143_v31  ;;  %v54_v42 = vld [vmem:[%s1106_s0 + $0x2c] sm:$0xf]  ;;  %239 = vst [vmem:[#allocation1 + $0x1] ss:$4 sm:$0xff] %v52_v35  ;;  %v55_v43 = vld [vmem:[%s1106_s0 + $0x30] sm:$0xf] }
  0x1a   :  { %366 = vmatpush.msra.mxu0 %v126_v32  ;;  %240 = vst [vmem:[#allocation1 + $0x2] ss:$4 sm:$0xff] %v53_v36  ;;  %v56_v44 = vld [vmem:[%s1106_s0 + $0x34] sm:$0xf]  ;;  %v140_v45 = vld [vmem:[%s1107_s1 + $0x88] sm:$0xff]  ;;  %692 = vmatpush.msra.mxu3 %v126_v32  ;;  %v123_v49 = vld [vmem:[%s1107_s1] sm:$0xff] }
  0x1b   :  { %431 = vmatpush.msra.mxu1 %v142_v34  ;;  %v236_v46 = vld.sshfl [vmem:[#allocation1 + $0x20] sm:$0xff pattern:$0x73625140]  ;;  %v237_v48 = vld.sshfl [vmem:[#allocation1 + $0x28] sm:$0xff pattern:$0x73625140] }
  0x1c   :  { %367 = vmatpush.msra.mxu0 %v125_v39  ;;  %241 = vst [vmem:[#allocation1 + $0x3] ss:$4 sm:$0xff] %v54_v42  ;;  %v139_v50 = vld [vmem:[%s1107_s1 + $0x80] sm:$0xff]  ;;  %v58_v51 = vld [vmem:[%s1106_s0 + $0x3c] sm:$0xf]  ;;  %693 = vmatpush.msra.mxu3 %v125_v39  ;;  %s654_s14 = sshll.u32 %s1111_s5, 4  ;;  %s655_s14 = int_to_ptr.hbm [resolvable:$true] %s654_s14 }
  0x1d   :  { %432 = vmatpush.msra.mxu1 %v141_v40  ;;  %242 = vst [vmem:[#allocation1 + $0x20] ss:$4 sm:$0xff] %v55_v43  ;;  %v59_v52 = vld [vmem:[%s1106_s0 + $0x40] sm:$0xf]  ;;  %v60_v53 = vld [vmem:[%s1106_s0 + $0x44] sm:$0xf] }
  0x1e   :  { %368 = vmatpush.msra.mxu0 %v124_v41  ;;  %243 = vst [vmem:[#allocation1 + $0x21] ss:$4 sm:$0xff] %v56_v44  ;;  %694 = vmatpush.msra.mxu3 %v124_v41  ;;  %v61_v54 = vld [vmem:[%s1106_s0 + $0x48] sm:$0xf]  ;;  %v62_v57 = vld [vmem:[%s1106_s0 + $0x4c] sm:$0xf] }
  0x1f   :  { %433 = vmatpush.msra.mxu1 %v140_v45  ;;  %244 = vst [vmem:[#allocation1 + $0x22] ss:$4 sm:$0xff] %v57_v47  ;;  %v63_v58 = vld [vmem:[%s1106_s0 + $0x50] sm:$0xf]  ;;  %v64_v59 = vld [vmem:[%s1106_s0 + $0x54] sm:$0xf] }
  0x20   :  { %369 = vmatpush.msra.mxu0 %v123_v49  ;;  %245 = vst [vmem:[#allocation1 + $0x23] ss:$4 sm:$0xff] %v58_v51  ;;  %695 = vmatpush.msra.mxu3 %v123_v49  ;;  %v65_v61 = vld [vmem:[%s1106_s0 + $0x58] sm:$0xf]  ;;  %v66_v63 = vld [vmem:[%s1106_s0 + $0x5c] sm:$0xf] }
  0x21   :  { %434 = vmatpush.msra.mxu1 %v139_v50  ;;  %370 = vmatmul.f32.vlgmr.msra.gmra.mxu0 %v234_v37  ;;  %v67_v0 = vld [vmem:[%s1106_s0 + $0x60] sm:$0xf]  ;;  %v68_v1 = vld [vmem:[%s1106_s0 + $0x64] sm:$0xf]  ;;  %v69_v2 = vld [vmem:[%s1106_s0 + $0x68] sm:$0xf] }
  0x22   :  { %435 = vmatmul.f32.vlgmr.msra.gmra.mxu1 %v235_v38  ;;  %v70_v5 = vld [vmem:[%s1106_s0 + $0x6c] sm:$0xf]  ;;  %v71_v6 = vld [vmem:[%s1106_s0 + $0x70] sm:$0xf]  ;;  %v72_v7 = vld [vmem:[%s1106_s0 + $0x74] sm:$0xf] }
  0x23   :  { %v246_v55 = vld.sshfl [vmem:[#allocation1] sm:$0xff pattern:$0x73625140]  ;;  %v247_v56 = vld.sshfl [vmem:[#allocation1 + $0x8] sm:$0xff pattern:$0x73625140] }
  0x24   :  { %250 = vst [vmem:[#allocation1] ss:$4 sm:$0xff] %v59_v52  ;;  %v73_v9 = vld [vmem:[%s1106_s0 + $0x78] sm:$0xf]  ;;  %v74_v11 = vld [vmem:[%s1106_s0 + $0x7c] sm:$0xf] }
  0x25   :  { %251 = vst [vmem:[#allocation1 + $0x1] ss:$4 sm:$0xff] %v60_v53  ;;  %v75_v12 = vld [vmem:[%s1106_s0 + $0x80] sm:$0xf]  ;;  %v76_v13 = vld [vmem:[%s1106_s0 + $0x84] sm:$0xf] }
  0x26   :  { %252 = vst [vmem:[#allocation1 + $0x2] ss:$4 sm:$0xff] %v61_v54  ;;  %v77_v14 = vld [vmem:[%s1106_s0 + $0x88] sm:$0xf]  ;;  %v78_v17 = vld [vmem:[%s1106_s0 + $0x8c] sm:$0xf] }
  0x27   :  { %v248_v60 = vld.sshfl [vmem:[#allocation1 + $0x20] sm:$0xff pattern:$0x73625140]  ;;  %v249_v62 = vld.sshfl [vmem:[#allocation1 + $0x28] sm:$0xff pattern:$0x73625140] }
  0x28   :  { %253 = vst [vmem:[#allocation1 + $0x3] ss:$4 sm:$0xff] %v62_v57  ;;  %v79_v20 = vld [vmem:[%s1106_s0 + $0x90] sm:$0xf]  ;;  %v80_v21 = vld [vmem:[%s1106_s0 + $0x94] sm:$0xf] }
  0x29   :  { %373 = vmatmul.f32.gmra.mxu0 %v236_v46  ;;  %254 = vst [vmem:[#allocation1 + $0x20] ss:$4 sm:$0xff] %v63_v58  ;;  %v81_v22 = vld [vmem:[%s1106_s0 + $0x98] sm:$0xf]  ;;  %v82_v23 = vld [vmem:[%s1106_s0 + $0x9c] sm:$0xf] }
  0x2a   :  { %438 = vmatmul.f32.gmra.mxu1 %v237_v48  ;;  %255 = vst [vmem:[#allocation1 + $0x21] ss:$4 sm:$0xff] %v64_v59  ;;  %v83_v24 = vld [vmem:[%s1106_s0 + $0xa0] sm:$0xf]  ;;  %v84_v25 = vld [vmem:[%s1106_s0 + $0xa4] sm:$0xf] }
  0x2b   :  { %256 = vst [vmem:[#allocation1 + $0x22] ss:$4 sm:$0xff] %v65_v61  ;;  %v85_v26 = vld [vmem:[%s1106_s0 + $0xa8] sm:$0xf]  ;;  %v86_v29 = vld [vmem:[%s1106_s0 + $0xac] sm:$0xf] }
  0x2c   :  { %257 = vst [vmem:[#allocation1 + $0x23] ss:$4 sm:$0xff] %v66_v63  ;;  %v87_v30 = vld [vmem:[%s1106_s0 + $0xb0] sm:$0xf]  ;;  %v88_v31 = vld [vmem:[%s1106_s0 + $0xb4] sm:$0xf] }
  0x2d   :  { %v89_v34 = vld [vmem:[%s1106_s0 + $0xb8] sm:$0xf]  ;;  %v90_v35 = vld [vmem:[%s1106_s0 + $0xbc] sm:$0xf]  ;;  %v91_v36 = vld [vmem:[%s1106_s0 + $0xc0] sm:$0xf] }
  0x2e   :  { %v92_v37 = vld [vmem:[%s1106_s0 + $0xc4] sm:$0xf]  ;;  %v93_v38 = vld [vmem:[%s1106_s0 + $0xc8] sm:$0xf]  ;;  %v94_v41 = vld [vmem:[%s1106_s0 + $0xcc] sm:$0xf] }
  0x2f   :  { %v258_v3 = vld.sshfl [vmem:[#allocation1] sm:$0xff pattern:$0x73625140]  ;;  %v259_v4 = vld.sshfl [vmem:[#allocation1 + $0x8] sm:$0xff pattern:$0x73625140] }
  0x30   :  { %262 = vst [vmem:[#allocation1] ss:$4 sm:$0xff] %v67_v0  ;;  %v95_v44 = vld [vmem:[%s1106_s0 + $0xd0] sm:$0xf]  ;;  %v96_v45 = vld [vmem:[%s1106_s0 + $0xd4] sm:$0xf] }
  0x31   :  { %376 = vmatmul.f32.gmra.mxu0 %v246_v55  ;;  %263 = vst [vmem:[#allocation1 + $0x1] ss:$4 sm:$0xff] %v68_v1  ;;  %v97_v46 = vld [vmem:[%s1106_s0 + $0xd8] sm:$0xf]  ;;  %v98_v47 = vld [vmem:[%s1106_s0 + $0xdc] sm:$0xf] }
  0x32   :  { %441 = vmatmul.f32.gmra.mxu1 %v247_v56  ;;  %264 = vst [vmem:[#allocation1 + $0x2] ss:$4 sm:$0xff] %v69_v2  ;;  %v99_v50 = vld [vmem:[%s1106_s0 + $0xe0] sm:$0xf]  ;;  %v100_v51 = vld [vmem:[%s1106_s0 + $0xe4] sm:$0xf] }
  0x33   :  { %v260_v8 = vld.sshfl [vmem:[#allocation1 + $0x20] sm:$0xff pattern:$0x73625140]  ;;  %v261_v10 = vld.sshfl [vmem:[#allocation1 + $0x28] sm:$0xff pattern:$0x73625140] }
  0x34   :  { %265 = vst [vmem:[#allocation1 + $0x3] ss:$4 sm:$0xff] %v70_v5  ;;  %v101_v52 = vld [vmem:[%s1106_s0 + $0xe8] sm:$0xf]  ;;  %v102_v53 = vld [vmem:[%s1106_s0 + $0xec] sm:$0xf] }
  0x35   :  { %266 = vst [vmem:[#allocation1 + $0x20] ss:$4 sm:$0xff] %v71_v6  ;;  %v103_v56 = vld [vmem:[%s1106_s0 + $0xf0] sm:$0xf]  ;;  %v104_v57 = vld [vmem:[%s1106_s0 + $0xf4] sm:$0xf] }
  0x36   :  { %267 = vst [vmem:[#allocation1 + $0x21] ss:$4 sm:$0xff] %v72_v7  ;;  %v105_v58 = vld [vmem:[%s1106_s0 + $0xf8] sm:$0xf]  ;;  %v106_v59 = vld [vmem:[%s1106_s0 + $0xfc] sm:$0xf] }
  0x37   :  { %268 = vst [vmem:[#allocation1 + $0x22] ss:$4 sm:$0xff] %v73_v9 }
  0x38   :  { %269 = vst [vmem:[#allocation1 + $0x23] ss:$4 sm:$0xff] %v74_v11 }
  0x39   :  { %379 = vmatmul.f32.gmra.mxu0 %v248_v60 }
  0x3a   :  { %444 = vmatmul.f32.gmra.mxu1 %v249_v62  ;;  %v725_v62 = vmov 0.0  }
  0x3b   :  { %v270_v15 = vld.sshfl [vmem:[#allocation1] sm:$0xff pattern:$0x73625140]  ;;  %v271_v16 = vld.sshfl [vmem:[#allocation1 + $0x8] sm:$0xff pattern:$0x73625140] }
  0x3c   :  { %274 = vst [vmem:[#allocation1] ss:$4 sm:$0xff] %v75_v12 }
  0x3d   :  { %275 = vst [vmem:[#allocation1 + $0x1] ss:$4 sm:$0xff] %v76_v13 }
  0x3e   :  { %276 = vst [vmem:[#allocation1 + $0x2] ss:$4 sm:$0xff] %v77_v14 }
  0x3f   :  { %v272_v18 = vld.sshfl [vmem:[#allocation1 + $0x20] sm:$0xff pattern:$0x73625140]  ;;  %v273_v19 = vld.sshfl [vmem:[#allocation1 + $0x28] sm:$0xff pattern:$0x73625140] }
  0x40   :  { %277 = vst [vmem:[#allocation1 + $0x3] ss:$4 sm:$0xff] %v78_v17 }
  0x41   :  { %382 = vmatmul.f32.gmra.mxu0 %v258_v3  ;;  %278 = vst [vmem:[#allocation1 + $0x20] ss:$4 sm:$0xff] %v79_v20 }
  0x42   :  { %447 = vmatmul.f32.gmra.mxu1 %v259_v4  ;;  %279 = vst [vmem:[#allocation1 + $0x21] ss:$4 sm:$0xff] %v80_v21 }
  0x43   :  { %280 = vst [vmem:[#allocation1 + $0x22] ss:$4 sm:$0xff] %v81_v22 }
  0x44   :  { %281 = vst [vmem:[#allocation1 + $0x23] ss:$4 sm:$0xff] %v82_v23 }
  0x45   :  { %27 = vst.msk [vmem:[#allocation2] sm:$0xff] %vm26_vm0, %v725_v62 }
  0x46   :  { %28 = vst.msk [vmem:[#allocation2 + $0x8] sm:$0xff] %vm26_vm0, %v725_v62 }
  0x47   :  { %v282_v27 = vld.sshfl [vmem:[#allocation1] sm:$0xff pattern:$0x73625140]  ;;  %v283_v28 = vld.sshfl [vmem:[#allocation1 + $0x8] sm:$0xff pattern:$0x73625140] }
  0x48   :  { %286 = vst [vmem:[#allocation1] ss:$4 sm:$0xff] %v83_v24 }
  0x49   :  { %385 = vmatmul.f32.gmra.mxu0 %v260_v8  ;;  %287 = vst [vmem:[#allocation1 + $0x1] ss:$4 sm:$0xff] %v84_v25 }
  0x4a   :  { %450 = vmatmul.f32.gmra.mxu1 %v261_v10  ;;  %288 = vst [vmem:[#allocation1 + $0x2] ss:$4 sm:$0xff] %v85_v26 }
  0x4b   :  { %v284_v32 = vld.sshfl [vmem:[#allocation1 + $0x20] sm:$0xff pattern:$0x73625140]  ;;  %v285_v33 = vld.sshfl [vmem:[#allocation1 + $0x28] sm:$0xff pattern:$0x73625140] }
  0x4c   :  { %289 = vst [vmem:[#allocation1 + $0x3] ss:$4 sm:$0xff] %v86_v29  ;;  %v107_v2 = vld [vmem:[#allocation2] sm:$0xff] }
  0x4d   :  { %290 = vst [vmem:[#allocation1 + $0x20] ss:$4 sm:$0xff] %v87_v30  ;;  %v108_v7 = vld [vmem:[#allocation2 + $0x8] sm:$0xff] }
  0x4e   :  { %291 = vst [vmem:[#allocation1 + $0x21] ss:$4 sm:$0xff] %v88_v31 }
  0x4f   :  { %292 = vst [vmem:[#allocation1 + $0x22] ss:$4 sm:$0xff] %v89_v34 }
  0x50   :  { %293 = vst [vmem:[#allocation1 + $0x23] ss:$4 sm:$0xff] %v90_v35 }
  0x51   :  { %388 = vmatmul.f32.gmra.mxu0 %v270_v15  ;;  %29 = vst.msk [vmem:[#allocation2 + $0x10] sm:$0xff] %vm26_vm0, %v725_v62 }
  0x52   :  { %453 = vmatmul.f32.gmra.mxu1 %v271_v16  ;;  %30 = vst.msk [vmem:[#allocation2 + $0x18] sm:$0xff] %vm26_vm0, %v725_v62 }
  0x53   :  { %v294_v39 = vld.sshfl [vmem:[#allocation1] sm:$0xff pattern:$0x73625140]  ;;  %v295_v40 = vld.sshfl [vmem:[#allocation1 + $0x8] sm:$0xff pattern:$0x73625140] }
  0x54   :  { %400 = vmatmul.f32.vlgmr.msra.gmra.mxu3 %v294_v39  ;;  %298 = vst [vmem:[#allocation1] ss:$4 sm:$0xff] %v91_v36 }
  0x55   :  { %299 = vst [vmem:[#allocation1 + $0x1] ss:$4 sm:$0xff] %v92_v37 }
  0x56   :  { %300 = vst [vmem:[#allocation1 + $0x2] ss:$4 sm:$0xff] %v93_v38 }
  0x57   :  { %301 = vst [vmem:[#allocation1 + $0x3] ss:$4 sm:$0xff] %v94_v41  ;;  %v296_v42 = vld.sshfl [vmem:[#allocation1 + $0x20] sm:$0xff pattern:$0x73625140] }
  0x58   :  { %v297_v43 = vld.sshfl [vmem:[#allocation1 + $0x28] sm:$0xff pattern:$0x73625140]  ;;  %31 = vst.msk [vmem:[#allocation2 + $0x20] sm:$0xff] %vm26_vm0, %v725_v62  ;;  %v109_v12 = vld [vmem:[#allocation2 + $0x10] sm:$0xff] }
  0x59   :  { %391 = vmatmul.f32.gmra.mxu0 %v272_v18  ;;  %302 = vst [vmem:[#allocation1 + $0x20] ss:$4 sm:$0xff] %v95_v44  ;;  %v110_v17 = vld [vmem:[#allocation2 + $0x18] sm:$0xff] }
  0x5a   :  { %456 = vmatmul.f32.gmra.mxu1 %v273_v19  ;;  %303 = vst [vmem:[#allocation1 + $0x21] ss:$4 sm:$0xff] %v96_v45 }
  0x5b   :  { %304 = vst [vmem:[#allocation1 + $0x22] ss:$4 sm:$0xff] %v97_v46 }
  0x5c   :  { %403 = vmatmul.f32.gmra.mxu3 %v296_v42  ;;  %305 = vst [vmem:[#allocation1 + $0x23] ss:$4 sm:$0xff] %v98_v47 }
  0x5d   :  { %32 = vst.msk [vmem:[#allocation2 + $0x28] sm:$0xff] %vm26_vm0, %v725_v62 }
  0x5e   :  { %v306_v48 = vld.sshfl [vmem:[#allocation1] sm:$0xff pattern:$0x73625140]  ;;  %v307_v49 = vld.sshfl [vmem:[#allocation1 + $0x8] sm:$0xff pattern:$0x73625140] }
  0x5f   :  { %310 = vst [vmem:[#allocation1] ss:$4 sm:$0xff] %v99_v50  ;;  %v111_v22 = vld [vmem:[#allocation2 + $0x20] sm:$0xff] }
  0x60   :  { %311 = vst [vmem:[#allocation1 + $0x1] ss:$4 sm:$0xff] %v100_v51 }
  0x61   :  { %394 = vmatmul.f32.gmra.mxu0 %v282_v27  ;;  %312 = vst [vmem:[#allocation1 + $0x2] ss:$4 sm:$0xff] %v101_v52 }
  0x62   :  { %459 = vmatmul.f32.gmra.mxu1 %v283_v28  ;;  %313 = vst [vmem:[#allocation1 + $0x3] ss:$4 sm:$0xff] %v102_v53 }
  0x63   :  { %v308_v54 = vld.sshfl [vmem:[#allocation1 + $0x20] sm:$0xff pattern:$0x73625140]  ;;  %v309_v55 = vld.sshfl [vmem:[#allocation1 + $0x28] sm:$0xff pattern:$0x73625140] }
  0x64   :  { %406 = vmatmul.f32.gmra.mxu3 %v306_v48  ;;  %314 = vst [vmem:[#allocation1 + $0x20] ss:$4 sm:$0xff] %v103_v56  ;;  %v112_v27 = vld [vmem:[#allocation2 + $0x28] sm:$0xff] }
  0x65   :  { %315 = vst [vmem:[#allocation1 + $0x21] ss:$4 sm:$0xff] %v104_v57 }
  0x66   :  { %316 = vst [vmem:[#allocation1 + $0x22] ss:$4 sm:$0xff] %v105_v58 }
  0x67   :  { %317 = vst [vmem:[#allocation1 + $0x23] ss:$4 sm:$0xff] %v106_v59 }
  0x68   :  { %33 = vst.msk [vmem:[#allocation2 + $0x30] sm:$0xff] %vm26_vm0, %v725_v62 }
  0x69   :  { %397 = vmatmul.f32.gmra.mxu0 %v284_v32  ;;  %v318_v60 = vld.sshfl [vmem:[#allocation1] sm:$0xff pattern:$0x73625140]  ;;  %34 = vst.msk [vmem:[#allocation2 + $0x38] sm:$0xff] %vm26_vm0, %v725_v62 }
  0x6a   :  { %462 = vmatmul.f32.gmra.mxu1 %v285_v33  ;;  %35 = vst.msk [vmem:[#allocation2 + $0x40] sm:$0xff] %vm26_vm0, %v725_v62  ;;  %v319_v63 = vld.sshfl [vmem:[#allocation1 + $0x8] sm:$0xff pattern:$0x73625140] }
  0x6b   :  { %36 = vst.msk [vmem:[#allocation2 + $0x48] sm:$0xff] %vm26_vm0, %v725_v62 }
  0x6c   :  { %409 = vmatmul.f32.gmra.mxu3 %v308_v54  ;;  %37 = vst.msk [vmem:[#allocation2 + $0x50] sm:$0xff] %vm26_vm0, %v725_v62 }
  0x6d   :  { %38 = vst.msk [vmem:[#allocation2 + $0x58] sm:$0xff] %vm26_vm0, %v725_v62 }
  0x6e   :  { %v320_v61 = vld.sshfl [vmem:[#allocation1 + $0x20] sm:$0xff pattern:$0x73625140]  ;;  %39 = vst.msk [vmem:[#allocation2 + $0x60] sm:$0xff] %vm26_vm0, %v725_v62 }
  0x6f   :  { %40 = vst.msk [vmem:[#allocation2 + $0x68] sm:$0xff] %vm26_vm0, %v725_v62  ;;  %v321_v0 = vld.sshfl [vmem:[#allocation1 + $0x28] sm:$0xff pattern:$0x73625140]  ;;  %v113_v32 = vld [vmem:[#allocation2 + $0x30] sm:$0xff] }
  0x70   :  { %41 = vst.msk [vmem:[#allocation2 + $0x70] sm:$0xff] %vm26_vm0, %v725_v62  ;;  %v114_v37 = vld [vmem:[#allocation2 + $0x38] sm:$0xff] }
  0x71   :  { %42 = vst.msk [vmem:[#allocation2 + $0x78] sm:$0xff] %vm26_vm0, %v725_v62  ;;  %v115_v42 = vld [vmem:[#allocation2 + $0x40] sm:$0xff] }
  0x72   :  { %465 = vmatmul.f32.gmra.mxu1 %v295_v40  ;;  %v116_v48 = vld [vmem:[#allocation2 + $0x48] sm:$0xff] }
  0x73   :  { %v117_v53 = vld [vmem:[#allocation2 + $0x50] sm:$0xff] }
  0x74   :  { %412 = vmatmul.f32.gmra.mxu3 %v318_v60  ;;  %v118_v57 = vld [vmem:[#allocation2 + $0x58] sm:$0xff] }
  0x75   :  { %v119_v62 = vld [vmem:[#allocation2 + $0x60] sm:$0xff] }
  0x7a   :  { %468 = vmatmul.f32.gmra.mxu1 %v297_v43 }
  0x7c   :  { %415 = vmatmul.f32.gmra.mxu3 %v320_v61 }
  0x82   :  { %471 = vmatmul.f32.gmra.mxu1 %v307_v49 }
  0x8a   :  { %474 = vmatmul.f32.gmra.mxu1 %v309_v55 }
  0x92   :  { %477 = vmatmul.f32.gmra.mxu1 %v319_v63 }
  0x9a   :  { %480 = vmatmul.f32.gmra.mxu1 %v321_v0 }
  0x9e   :  { %v371_v1 = vpop.f32.mrf.mxu0 }
  0x9f   :  { %v436_v3 = vpop.f32.mrf.mxu1 }
  0xa0   :  { %v437_v4 = vadd.f32 %v436_v3, %v371_v1  ;;  %v120_v3 = vld [vmem:[#allocation2 + $0x68] sm:$0xff] }
  0xa2   :  { %v484_v5 = vadd.f32 %v437_v4, %v107_v2 }
  0xa4   :  { %501 = vst.msk [vmem:[#allocation2] sm:$0xff] %vm26_vm0, %v484_v5 }
  0xa6   :  { %v374_v6 = vpop.f32.mrf.mxu0 }
  0xa7   :  { %v439_v8 = vpop.f32.mrf.mxu1 }
  0xa8   :  { %v440_v9 = vadd.f32 %v439_v8, %v374_v6  ;;  %v121_v8 = vld [vmem:[#allocation2 + $0x70] sm:$0xff] }
  0xaa   :  { %v485_v10 = vadd.f32 %v440_v9, %v108_v7 }
  0xac   :  { %502 = vst.msk [vmem:[#allocation2 + $0x8] sm:$0xff] %vm26_vm0, %v485_v10 }
  0xae   :  { %v377_v11 = vpop.f32.mrf.mxu0 }
  0xaf   :  { %v442_v13 = vpop.f32.mrf.mxu1 }
  0xb0   :  { %v443_v14 = vadd.f32 %v442_v13, %v377_v11  ;;  %v122_v13 = vld [vmem:[#allocation2 + $0x78] sm:$0xff] }
  0xb2   :  { %v486_v15 = vadd.f32 %v443_v14, %v109_v12 }
  0xb4   :  { %503 = vst.msk [vmem:[#allocation2 + $0x10] sm:$0xff] %vm26_vm0, %v486_v15 }
  0xb6   :  { %v380_v16 = vpop.f32.mrf.mxu0 }
  0xb7   :  { %v445_v18 = vpop.f32.mrf.mxu1 }
  0xb8   :  { %v446_v19 = vadd.f32 %v445_v18, %v380_v16 }
  0xba   :  { %v487_v20 = vadd.f32 %v446_v19, %v110_v17  ;;  %v698_v17 = vld [vmem:[%s1108_s2] ss:$0 sm:$0xff] }
  0xbc   :  { %504 = vst.msk [vmem:[#allocation2 + $0x18] sm:$0xff] %vm26_vm0, %v487_v20 }
  0xbe   :  { %v383_v21 = vpop.f32.mrf.mxu0 }
  0xbf   :  { %v448_v23 = vpop.f32.mrf.mxu1 }
  0xc0   :  { %v449_v24 = vadd.f32 %v448_v23, %v383_v21 }
  0xc2   :  { %v488_v25 = vadd.f32 %v449_v24, %v111_v22 }
  0xc4   :  { %505 = vst.msk [vmem:[#allocation2 + $0x20] sm:$0xff] %vm26_vm0, %v488_v25 }
  0xc6   :  { %v386_v26 = vpop.f32.mrf.mxu0 }
  0xc7   :  { %v451_v28 = vpop.f32.mrf.mxu1 }
  0xc8   :  { %v452_v29 = vadd.f32 %v451_v28, %v386_v26 }
  0xca   :  { %v489_v30 = vadd.f32 %v452_v29, %v112_v27 }
  0xcc   :  { %506 = vst.msk [vmem:[#allocation2 + $0x28] sm:$0xff] %vm26_vm0, %v489_v30 }
  0xce   :  { %v389_v31 = vpop.f32.mrf.mxu0 }
  0xcf   :  { %v454_v33 = vpop.f32.mrf.mxu1 }
  0xd0   :  { %v455_v34 = vadd.f32 %v454_v33, %v389_v31 }
  0xd2   :  { %v490_v35 = vadd.f32 %v455_v34, %v113_v32 }
  0xd4   :  { %507 = vst.msk [vmem:[#allocation2 + $0x30] sm:$0xff] %vm26_vm0, %v490_v35 }
  0xd6   :  { %v392_v36 = vpop.f32.mrf.mxu0 }
  0xd7   :  { %v457_v38 = vpop.f32.mrf.mxu1  ;;  %v401_v46 = vpop.f32.mrf.mxu3 }
  0xd8   :  { %v458_v39 = vadd.f32 %v457_v38, %v392_v36 }
  0xda   :  { %v491_v40 = vadd.f32 %v458_v39, %v114_v37 }
  0xdc   :  { %508 = vst.msk [vmem:[#allocation2 + $0x38] sm:$0xff] %vm26_vm0, %v491_v40 }
  0xde   :  { %v395_v41 = vpop.f32.mrf.mxu0 }
  0xdf   :  { %v460_v43 = vpop.f32.mrf.mxu1  ;;  %v404_v52 = vpop.f32.mrf.mxu3 }
  0xe0   :  { %v461_v44 = vadd.f32 %v460_v43, %v395_v41 }
  0xe2   :  { %v492_v45 = vadd.f32 %v461_v44, %v115_v42  ;;  %v526_v44 = vld [vmem:[#allocation2 + $0x30] sm:$0xff] }
  0xe3   :  { %v527_v41 = vld [vmem:[#allocation2 + $0x38] sm:$0xff] }
  0xe4   :  { %509 = vst.msk [vmem:[#allocation2 + $0x40] sm:$0xff] %vm26_vm0, %v492_v45  ;;  %v547_v43 = vadd.f32 %v698_v17, %v527_v41 }
  0xe6   :  { %v398_v47 = vpop.f32.mrf.mxu0  ;;  %v563_v45 = vmax.f32 %v547_v43, 0.0 }
  0xe7   :  { %v463_v49 = vpop.f32.mrf.mxu1  ;;  %v407_v59 = vpop.f32.mrf.mxu3 }
  0xe8   :  { %v464_v50 = vadd.f32 %v463_v49, %v398_v47  ;;  %v525_v47 = vld [vmem:[#allocation2 + $0x28] sm:$0xff] }
  0xe9   :  { %v545_v49 = vadd.f32 %v698_v17, %v525_v47 }
  0xea   :  { %v493_v51 = vadd.f32 %v464_v50, %v116_v48  ;;  %v524_v50 = vld [vmem:[#allocation2 + $0x20] sm:$0xff] }
  0xeb   :  { %v528_v38 = vld [vmem:[#allocation2 + $0x40] sm:$0xff] }
  0xec   :  { %510 = vst.msk [vmem:[#allocation2 + $0x48] sm:$0xff] %vm26_vm0, %v493_v51  ;;  %v548_v40 = vadd.f32 %v698_v17, %v528_v38  ;;  %v561_v51 = vmax.f32 %v545_v49, 0.0 }
  0xee   :  { %v564_v42 = vmax.f32 %v548_v40, 0.0 }
  0xef   :  { %v466_v54 = vpop.f32.mrf.mxu1  ;;  %v410_v1 = vpop.f32.mrf.mxu3 }
  0xf0   :  { %v467_v55 = vadd.f32 %v466_v54, %v401_v46  ;;  %v546_v46 = vadd.f32 %v698_v17, %v526_v44 }
  0xf2   :  { %v494_v56 = vadd.f32 %v467_v55, %v117_v53  ;;  %v562_v48 = vmax.f32 %v546_v46, 0.0  ;;  %v523_v53 = vld [vmem:[#allocation2 + $0x18] sm:$0xff] }
  0xf3   :  { %v529_v35 = vld [vmem:[#allocation2 + $0x48] sm:$0xff]  ;;  %v543_v55 = vadd.f32 %v698_v17, %v523_v53 }
  0xf4   :  { %511 = vst.msk [vmem:[#allocation2 + $0x50] sm:$0xff] %vm26_vm0, %v494_v56  ;;  %v549_v37 = vadd.f32 %v698_v17, %v529_v35  ;;  %v522_v56 = vld [vmem:[#allocation2 + $0x10] sm:$0xff] }
  0xf6   :  { %v565_v39 = vmax.f32 %v549_v37, 0.0 }
  0xf7   :  { %v469_v58 = vpop.f32.mrf.mxu1  ;;  %v413_v7 = vpop.f32.mrf.mxu3 }
  0xf8   :  { %v470_v60 = vadd.f32 %v469_v58, %v404_v52  ;;  %v544_v52 = vadd.f32 %v698_v17, %v524_v50  ;;  %v542_v58 = vadd.f32 %v698_v17, %v522_v56 }
  0xfa   :  { %v495_v61 = vadd.f32 %v470_v60, %v118_v57  ;;  %v560_v54 = vmax.f32 %v544_v52, 0.0  ;;  %v559_v57 = vmax.f32 %v543_v55, 0.0  ;;  %v558_v60 = vmax.f32 %v542_v58, 0.0 }
  0xfb   :  { %v530_v32 = vld [vmem:[#allocation2 + $0x50] sm:$0xff] }
  0xfc   :  { %512 = vst.msk [vmem:[#allocation2 + $0x58] sm:$0xff] %vm26_vm0, %v495_v61  ;;  %v550_v34 = vadd.f32 %v698_v17, %v530_v32 }
  0xfe   :  { %v566_v36 = vmax.f32 %v550_v34, 0.0 }
  0xff   :  { %v472_v63 = vpop.f32.mrf.mxu1  ;;  %v416_v12 = vpop.f32.mrf.mxu3 }
 0x100   :  { %v473_v0 = vadd.f32 %v472_v63, %v407_v59  ;;  %v521_v59 = vld [vmem:[#allocation2 + $0x8] sm:$0xff] }
 0x101   :  { %v541_v61 = vadd.f32 %v698_v17, %v521_v59 }
 0x102   :  { %v496_v2 = vadd.f32 %v473_v0, %v119_v62  ;;  %v520_v62 = vld [vmem:[#allocation2] sm:$0xff] }
 0x103   :  { %v531_v29 = vld [vmem:[#allocation2 + $0x58] sm:$0xff]  ;;  %v557_v63 = vmax.f32 %v541_v61, 0.0  ;;  %v540_v0 = vadd.f32 %v698_v17, %v520_v62 }
 0x104   :  { %513 = vst.msk [vmem:[#allocation2 + $0x60] sm:$0xff] %vm26_vm0, %v496_v2  ;;  %v551_v31 = vadd.f32 %v698_v17, %v531_v29  ;;  %v572_v2 = vld [vmem:[%s1109_s3] sm:$0x1] }
 0x106   :  { %v567_v33 = vmax.f32 %v551_v31, 0.0 }
 0x107   :  { %v475_v4 = vpop.f32.mrf.mxu1 }
 0x108   :  { %v476_v5 = vadd.f32 %v475_v4, %v410_v1  ;;  %v556_v1 = vmax.f32 %v540_v0, 0.0 }
 0x10a   :  { %v497_v6 = vadd.f32 %v476_v5, %v120_v3  ;;  %v574_v3 = vstv %s1110_s4 }
 0x10b   :  { %v532_v26 = vld [vmem:[#allocation2 + $0x60] sm:$0xff] }
 0x10c   :  { %514 = vst.msk [vmem:[#allocation2 + $0x68] sm:$0xff] %vm26_vm0, %v497_v6  ;;  %v552_v28 = vadd.f32 %v698_v17, %v532_v26 }
 0x10e   :  { %v568_v30 = vmax.f32 %v552_v28, 0.0 }
 0x10f   :  { %v478_v9 = vpop.f32.mrf.mxu1 }
 0x110   :  { %v479_v10 = vadd.f32 %v478_v9, %v413_v7 }
 0x112   :  { %v498_v11 = vadd.f32 %v479_v10, %v121_v8 }
 0x113   :  { %v533_v23 = vld [vmem:[#allocation2 + $0x68] sm:$0xff] }
 0x114   :  { %515 = vst.msk [vmem:[#allocation2 + $0x70] sm:$0xff] %vm26_vm0, %v498_v11  ;;  %v553_v25 = vadd.f32 %v698_v17, %v533_v23 }
 0x116   :  { %v569_v27 = vmax.f32 %v553_v25, 0.0 }
 0x117   :  { %v481_v14 = vpop.f32.mrf.mxu1 }
 0x118   :  { %v482_v15 = vadd.f32 %v481_v14, %v416_v12 }
 0x11a   :  { %v499_v16 = vadd.f32 %v482_v15, %v122_v13 }
 0x11b   :  { %v534_v19 = vld [vmem:[#allocation2 + $0x70] sm:$0xff] }
 0x11c   :  { %516 = vst.msk [vmem:[#allocation2 + $0x78] sm:$0xff] %vm26_vm0, %v499_v16  ;;  %v554_v22 = vadd.f32 %v698_v17, %v534_v19 }
 0x11e   :  { %v570_v24 = vmax.f32 %v554_v22, 0.0 }
 0x123   :  { %v535_v18 = vld [vmem:[#allocation2 + $0x78] sm:$0xff] }
 0x124   :  { %v555_v20 = vadd.f32 %v698_v17, %v535_v18 }
 0x126   :  { %v571_v21 = vmax.f32 %v555_v20, 0.0 }
 0x128   :  { %663 = vmatpush.xpose.msk.msra.mxu2 %vm26_vm0, %v571_v21 }
 0x12c   :  { %664 = vmatpush.xpose.msk.msra.mxu2 %vm26_vm0, %v570_v24 }
 0x130   :  { %665 = vmatpush.xpose.msk.msra.mxu2 %vm26_vm0, %v569_v27 }
 0x134   :  { %666 = vmatpush.xpose.msk.msra.mxu2 %vm26_vm0, %v568_v30 }
 0x138   :  { %667 = vmatpush.xpose.msk.msra.mxu2 %vm26_vm0, %v567_v33 }
 0x13c   :  { %668 = vmatpush.xpose.msk.msra.mxu2 %vm26_vm0, %v566_v36 }
 0x140   :  { %669 = vmatpush.xpose.msk.msra.mxu2 %vm26_vm0, %v565_v39 }
 0x144   :  { %670 = vmatpush.xpose.msk.msra.mxu2 %vm26_vm0, %v564_v42 }
 0x148   :  { %671 = vmatpush.xpose.msk.msra.mxu2 %vm26_vm0, %v563_v45 }
 0x14c   :  { %672 = vmatpush.xpose.msk.msra.mxu2 %vm26_vm0, %v562_v48 }
 0x150   :  { %673 = vmatpush.xpose.msk.msra.mxu2 %vm26_vm0, %v561_v51 }
 0x154   :  { %674 = vmatpush.xpose.msk.msra.mxu2 %vm26_vm0, %v560_v54 }
 0x158   :  { %675 = vmatpush.xpose.msk.msra.mxu2 %vm26_vm0, %v559_v57 }
 0x15c   :  { %676 = vmatpush.xpose.msk.msra.mxu2 %vm26_vm0, %v558_v60 }
 0x160   :  { %677 = vmatpush.xpose.msk.msra.mxu2 %vm26_vm0, %v557_v63 }
 0x164   :  { %678 = vmatpush.xpose.msk.msra.mxu2 %vm26_vm0, %v556_v1 }
 0x167   :  { %679 = vmatmul.msk.f32.vlgmr.msra.gmra.mxu2 %vm26_vm0, %v572_v2 }
 0x1ea   :  { %v643_v4 = vpop.f32.mrf.mxu2 }
 0x1eb   :  { %v644_v5 = vadd.f32 %v643_v4, %v574_v3 }
 0x1ed   :  { %646 = vst [vmem:[#allocation4] sm:$0x1] %v644_v5 }
 0x1ee   :  { %657 = dma.vmem_to_hbm [thread:$0]  %s653_s11, 16, %s655_s14, [#allocation5]  }
 0x1ef   :  { %723 = dma.done.wait [#allocation5], 16  }
 0x1f0   :  { %724 = vsyncadd [#allocation5], 4294967280 }
 0x1f1   :  { %662 = vsyncpa [#allocation5], 1 }

</bundles_post_ra>
